<compile_context>
chip_gen: v6e
topology: v6e:2x2x1
jax: 0.10.0
libtpu: 0.0.40
codegen_flags: <defaults>
</compile_context>

<pallas_src>
import functools

import jax
import jax.numpy as jnp
from jax.experimental import pallas as pl
from jax.experimental.pallas import tpu as pltpu


# ----------------------------------------------------------------------------
# TPU-generation detection (VMEM limit, TensorCore count, tile caps)
# ----------------------------------------------------------------------------
@functools.lru_cache(maxsize=None)
def _tpu_config():
    """Returns dict(vmem_limit, two_tc, tn_cap) for the current chip."""
    try:
        info = pltpu.get_tpu_info()
        vmem = int(getattr(info, "vmem_capacity_bytes", 0)) or 64 * 1024 * 1024
    except Exception:
        vmem = 64 * 1024 * 1024          # conservative fallback (v7x-sized)
    if vmem <= 64 * 1024 * 1024:
        # v7x-class: 64 MiB VMEM per TensorCore, 2 TCs per chip.
        return dict(vmem_limit=48 * 1024 * 1024, two_tc=True, tn_cap=2048)
    # v5e / v6e: 128 MiB VMEM, single TensorCore.
    return dict(vmem_limit=96 * 1024 * 1024, two_tc=False, tn_cap=4096)


# ----------------------------------------------------------------------------
# Fused Pallas kernels: tiled matmul + bias + (optional) activation epilogue
# ----------------------------------------------------------------------------
def _apply_act(y, activation):
    if activation == "leaky_relu":
        return jnp.where(y > 0, y, 0.01 * y)   # nn.LeakyReLU() default slope
    if activation == "relu":
        return jnp.maximum(y, 0.0)
    if activation == "tanh":
        return jnp.tanh(y)
    return y


def _matmul_bias_act_single_k_kernel(a_ref, w_ref, b_ref, o_ref, *, activation):
    # K fits in a single tile: no accumulator scratch, write straight out.
    y = jnp.dot(a_ref[...], w_ref[...], preferred_element_type=jnp.float32)
    y = y + b_ref[...]
    o_ref[...] = _apply_act(y, activation).astype(o_ref.dtype)


def _matmul_bias_act_kernel(a_ref, w_ref, b_ref, o_ref, acc_ref, *, activation):
    # Bias folded into the accumulator init (saves an epilogue VPU add).
    @pl.when(pl.program_id(2) == 0)
    def _():
        acc_ref[...] = jnp.broadcast_to(b_ref[...], acc_ref.shape)

    acc_ref[...] += jnp.dot(a_ref[...], w_ref[...],
                            preferred_element_type=jnp.float32)

    @pl.when(pl.program_id(2) == pl.num_programs(2) - 1)
    def _():
        o_ref[...] = _apply_act(acc_ref[...], activation).astype(o_ref.dtype)


def _pick_tile(dim, cap, unit):
    """Tile = dim when it fits under cap, otherwise the largest multiple of
    `unit` that divides dim and is <= cap (falls back to dim; callers keep all
    dims multiples of `unit` via padding, so the fallback is never the
    oversized case in this script)."""
    if dim <= cap:
        return dim
    t = (cap // unit) * unit
    while t >= unit:
        if dim % t == 0:
            return t
        t -= unit
    return dim


def linear_pallas(a, w, b, activation="none", out_dtype=jnp.float32):
    """act(a @ w + b) with a fused Pallas kernel.

    a: (M, K), w: (K, N), b: (N,). M % 8 == 0. a/w are fed to the MXU in bf16;
    accumulation is f32; output dtype is `out_dtype`.
    """
    cfg = _tpu_config()
    a = a.astype(jnp.bfloat16)
    w = w.astype(jnp.bfloat16)
    M, K = a.shape
    Kw, N = w.shape
    assert K == Kw and b.shape == (N,)
    b2 = b.astype(jnp.float32).reshape(1, N)

    tm = _pick_tile(M, 512, 8)             # large-M conv matmuls: few grid steps
    tn = _pick_tile(N, cfg["tn_cap"], 128)  # lane-dense, generation-sized tiles
    tk = _pick_tile(K, 2048, 128)           # K=2048 layer -> single-K fast path
    # Only on 2-TC chips (v7x): keep >= 2 blocks on the parallel (i, j) axes so
    # the second TensorCore is never idle.  On v5e/v6e this would just double
    # the grid-step overhead for nothing.
    if cfg["two_tc"] and (M // tm) * (N // tn) < 2 and M >= 16:
        tm = _pick_tile(M, max(8, tm // 2), 8)
    assert M % tm == 0 and N % tn == 0 and K % tk == 0
    n_k = K // tk
    grid = (M // tm, N // tn, n_k)

    if n_k == 1:
        kernel = functools.partial(_matmul_bias_act_single_k_kernel,
                                   activation=activation)
        scratch = []
    else:
        kernel = functools.partial(_matmul_bias_act_kernel,
                                   activation=activation)
        scratch = [pltpu.VMEM((tm, tn), jnp.float32)]

    return pl.pallas_call(
        kernel,
        out_shape=jax.ShapeDtypeStruct((M, N), out_dtype),
        grid_spec=pltpu.PrefetchScalarGridSpec(
            num_scalar_prefetch=0,
            grid=grid,
            in_specs=[
                pl.BlockSpec((tm, tk), lambda i, j, k: (i, k)),
                pl.BlockSpec((tk, tn), lambda i, j, k: (k, j)),
                pl.BlockSpec((1, tn), lambda i, j, k: (0, j)),
            ],
            out_specs=pl.BlockSpec((tm, tn), lambda i, j, k: (i, j)),
            scratch_shapes=scratch,
        ),
        compiler_params=pltpu.CompilerParams(
            # parallel (i, j) axes let the v7x megacore split the weight
            # stream across both TensorCores; k stays a serial reduction.
            dimension_semantics=("parallel", "parallel", "arbitrary"),
            vmem_limit_bytes=cfg["vmem_limit"],
        ),
    )(a, w, b2)


# ----------------------------------------------------------------------------
# Fused small-MLP head: act(act(z @ W1 + b1) @ W2 + b2) in ONE pallas_call.
# Both weights (~1.1 MiB bf16 for 128->256->2048) live in VMEM; at tiny batch
# this removes two kernel launches and the HBM round trips of the (M,256) /
# (M,2048) intermediates.
# ----------------------------------------------------------------------------
def _mlp_head_kernel(z_ref, w1_ref, b1_ref, w2_ref, b2_ref, o_ref):
    h = jnp.dot(z_ref[...], w1_ref[...], preferred_element_type=jnp.float32)
    h = h + b1_ref[...]
    h = jnp.where(h > 0, h, 0.01 * h)            # LeakyReLU
    h = h.astype(w2_ref.dtype)                   # back to bf16 for the MXU
    y = jnp.dot(h, w2_ref[...], preferred_element_type=jnp.float32)
    y = y + b2_ref[...]
    y = jnp.where(y > 0, y, 0.01 * y)            # LeakyReLU
    o_ref[...] = y.astype(o_ref.dtype)


def fused_mlp_head_pallas(z, w1, b1, w2, b2, out_dtype=jnp.bfloat16):
    """z: (M, K); w1: (K, N1); w2: (N1, N2). M % 8 == 0."""
    cfg = _tpu_config()
    M, K = z.shape
    N1 = w1.shape[1]
    N2 = w2.shape[1]
    assert w1.shape == (K, N1) and w2.shape == (N1, N2)
    return pl.pallas_call(
        _mlp_head_kernel,
        out_shape=jax.ShapeDtypeStruct((M, N2), out_dtype),
        grid_spec=pltpu.PrefetchScalarGridSpec(
            num_scalar_prefetch=0,
            grid=(1,),
            in_specs=[
                pl.BlockSpec((M, K), lambda i: (0, 0)),
                pl.BlockSpec((K, N1), lambda i: (0, 0)),
                pl.BlockSpec((1, N1), lambda i: (0, 0)),
                pl.BlockSpec((N1, N2), lambda i: (0, 0)),
                pl.BlockSpec((1, N2), lambda i: (0, 0)),
            ],
            out_specs=pl.BlockSpec((M, N2), lambda i: (0, 0)),
        ),
        compiler_params=pltpu.CompilerParams(
            dimension_semantics=("arbitrary",),
            vmem_limit_bytes=cfg["vmem_limit"],
        ),
    )(z.astype(jnp.bfloat16),
      w1.astype(jnp.bfloat16), b1.astype(jnp.float32).reshape(1, N1),
      w2.astype(jnp.bfloat16), b2.astype(jnp.float32).reshape(1, N2))


# ----------------------------------------------------------------------------
# ConvTranspose2d(k=4, s=2, p=1), NHWC, via joint sub-pixel decomposition
# ----------------------------------------------------------------------------
# Output pixel (2i+a, 2j+b) (parities a, b in {0,1}) only sees the 2x2 input
# neighbourhood xpad[i+a : i+a+2, j+b : j+b+2] (xpad = input padded by 1) with
# kernel taps kh = 3 + a - 2*th, kw = 3 + b - 2*tw. All four parities read from
# the same 3x3 window anchored at (i, j), so one 9-tap im2col + one matmul with
# a (9*Cin, 4*Cout) weight (invalid taps zero) computes the whole layer; a
# pixel shuffle then interleaves the parities.
def _build_subpixel_weight(w):
    """w: (Cin, Cout, 4, 4) PyTorch ConvTranspose2d layout ->
    (9*Cin, 4*Cout); rows ordered (tap = th*3+tw, ci), cols ((a*2+b), co)."""
    cin, cout = w.shape[0], w.shape[1]
    zeros = jnp.zeros((cin, cout), w.dtype)
    rows = []
    for th in range(3):
        for tw in range(3):
            groups = []
            for a in range(2):
                for b in range(2):
                    kh = 3 + a - 2 * th
                    kw = 3 + b - 2 * tw
                    if 0 <= kh < 4 and 0 <= kw < 4:
                        groups.append(w[:, :, kh, kw])
                    else:
                        groups.append(zeros)
            rows.append(jnp.concatenate(groups, axis=1))    # (Cin, 4*Cout)
    return jnp.concatenate(rows, axis=0)                    # (9*Cin, 4*Cout)


def conv_transpose_nhwc_pallas(x, w, b, activation="none",
                               out_dtype=jnp.float32):
    """x: (N, H, W, Cin) NHWC; w: (Cin, Cout, 4, 4); b: (Cout,).
    Returns (N, 2H, 2W, Cout), `out_dtype`, NHWC."""
    nb, h, wd, cin = x.shape
    cout = w.shape[1]

    xp = jnp.pad(x.astype(jnp.bfloat16), ((0, 0), (1, 1), (1, 1), (0, 0)))
    taps = [xp[:, th:th + h, tw:tw + wd, :]
            for th in range(3) for tw in range(3)]
    patches = jnp.concatenate(taps, axis=-1).reshape(nb * h * wd, 9 * cin)

    wmat = _build_subpixel_weight(w)                    # (9*Cin, 4*Cout)
    bias = jnp.tile(b.astype(jnp.float32), 4)           # (4*Cout,)

    # Pad K to a multiple of 128 (lane-aligned contraction dim).
    kdim = 9 * cin
    kpad = ((kdim + 127) // 128) * 128
    if kpad != kdim:
        patches = jnp.pad(patches, ((0, 0), (0, kpad - kdim)))
        wmat = jnp.pad(wmat, ((0, kpad - kdim), (0, 0)))

    # Pad output columns to a multiple of 128 (lane-dense stores).
    # TODO(synk): the joint sub-pixel weight is 5/9 zeros per parity group and
    # the last layer pads N 12->128; acceptable while these matmuls hide under
    # DMA at small batch.
    nc = 4 * cout
    npad = ((nc + 127) // 128) * 128
    if npad != nc:
        wmat = jnp.pad(wmat, ((0, 0), (0, npad - nc)))
        bias = jnp.pad(bias, (0, npad - nc))

    y = linear_pallas(patches, wmat, bias, activation=activation,
                      out_dtype=out_dtype)
    y = y[:, :nc].reshape(nb, h, wd, 2, 2, cout)
    y = y.transpose(0, 1, 3, 2, 4, 5).reshape(nb, 2 * h, 2 * wd, cout)
    return y


# ----------------------------------------------------------------------------
# Parameter init (deterministic, PyTorch-default-style uniform); weights are
# stored in bf16 so the big matrices stream from HBM at half width.
# ----------------------------------------------------------------------------
def _init_linear(key, fan_in, fan_out):
    kw, kb = jax.random.split(key)
    bound = fan_in ** -0.5
    w = jax.random.uniform(kw, (fan_in, fan_out), jnp.float32, -bound, bound)
    b = jax.random.uniform(kb, (fan_out,), jnp.float32, -bound, bound)
    return w.astype(jnp.bfloat16), b


def _init_convt(key, cin, cout, k=4):
    kw, kb = jax.random.split(key)
    bound = (cin * k * k) ** -0.5
    w = jax.random.uniform(kw, (cin, cout, k, k), jnp.float32, -bound, bound)
    b = jax.random.uniform(kb, (cout,), jnp.float32, -bound, bound)
    return w.astype(jnp.bfloat16), b


def init_generator_params(key, z_dim, out_channels=3):
    hidden_dims = [256, 2048, 16384]
    out_spatial = 8
    keys = jax.random.split(key, 6)
    mlp = []
    cin = z_dim
    for i, cout in enumerate(hidden_dims):
        mlp.append(_init_linear(keys[i], cin, cout))
        cin = cout
    dec_cin = hidden_dims[-1] // (out_spatial * out_spatial)   # 256
    dec = [
        _init_convt(keys[3], dec_cin, 128),
        _init_convt(keys[4], 128, 64),
        _init_convt(keys[5], 64, out_channels),
    ]
    return {"mlp": mlp, "dec": dec}


# ----------------------------------------------------------------------------
# Generator forward
# ----------------------------------------------------------------------------
OUT_SPATIAL = 8  # fixed by the reference module (self.out_spatial = 8)


@jax.jit
def generator_forward(params, z):
    """z: (N, z_dim) -> images (N, out_channels, 64, 64), NCHW (PyTorch)."""
    n = z.shape[0]

    # self.transform: three Linear + LeakyReLU. Pad the batch to a multiple of
    # 8 for sublane alignment; padded rows are discarded afterwards.
    mpad = max(8, ((n + 7) // 8) * 8)
    h = jnp.zeros((mpad, z.shape[1]), jnp.float32).at[:n].set(z)

    (w1, b1), (w2, b2), (w3, b3) = params["mlp"]
    if mpad <= 512:
        # Layers 1+2 fused into one pallas_call (weights fit VMEM trivially).
        h = fused_mlp_head_pallas(h, w1, b1, w2, b2, out_dtype=jnp.bfloat16)
    else:
        h = linear_pallas(h, w1, b1, activation="leaky_relu",
                          out_dtype=jnp.bfloat16)
        h = linear_pallas(h, w2, b2, activation="leaky_relu",
                          out_dtype=jnp.bfloat16)
    # Dominant layer (2048 -> 16384): single-K-tile path, bf16 write-back.
    h = linear_pallas(h, w3, b3, activation="leaky_relu",
                      out_dtype=jnp.bfloat16)
    h = h[:n]

    # z.view(N, -1, 8, 8) is NCHW; convert once to NHWC for the decoder.
    x = h.reshape(n, -1, OUT_SPATIAL, OUT_SPATIAL).transpose(0, 2, 3, 1)

    # DecoderCNN (see TODO at top of file), NHWC end-to-end.
    (c1w, c1b), (c2w, c2b), (c3w, c3b) = params["dec"]
    x = conv_transpose_nhwc_pallas(x, c1w, c1b, activation="relu",
                                   out_dtype=jnp.bfloat16)   # (N,16,16,128)
    x = conv_transpose_nhwc_pallas(x, c2w, c2b, activation="relu",
                                   out_dtype=jnp.bfloat16)   # (N,32,32, 64)
    x = conv_transpose_nhwc_pallas(x, c3w, c3b, activation="tanh",
                                   out_dtype=jnp.float32)    # (N,64,64,  C)

    return x.transpose(0, 3, 1, 2)   # single conversion back to NCHW


# ----------------------------------------------------------------------------
# Pure-jnp ConvTranspose2d(k=4, s=2, p=1) reference (output-scatter form),
# used only for an in-script correctness check of the sub-pixel lowering.
# ----------------------------------------------------------------------------
def _conv_transpose_ref_nhwc(x, w, b):
    nb, h, wd, cin = x.shape
    cout = w.shape[1]
    contrib = jnp.einsum("nhwi,iokl->nhwklo",
                         x.astype(jnp.float32), w.astype(jnp.float32))
    y = jnp.zeros((nb, 2 * h + 2, 2 * wd + 2, cout), jnp.float32)
    for kh in range(4):
        for kw in range(4):
            y = y.at[:, kh:kh + 2 * h:2, kw:kw + 2 * wd:2, :].add(
                contrib[:, :, :, kh, kw, :])
    return y[:, 1:-1, 1:-1, :] + b.astype(jnp.float32)


if __name__ == "__main__":
    z_dim = 128
    batch = 2
    out_channels = 3

    key = jax.random.PRNGKey(0)
    kp, kz, k1, k2, k3, k4, k5, k6, k7, k8 = jax.random.split(key, 10)

    # Unit check 1: fused matmul kernel, multi-k accumulation path (K=2304).
    xa = jax.random.normal(k1, (16, 2304), jnp.float32)
    wa = jax.random.normal(k2, (2304, 256), jnp.float32) * 0.02
    ba = jax.random.normal(k3, (256,), jnp.float32) * 0.1
    got = linear_pallas(xa, wa, ba, activation="none")
    ref = jnp.dot(xa.astype(jnp.bfloat16), wa.astype(jnp.bfloat16),
                  preferred_element_type=jnp.float32) + ba
    assert bool(jnp.allclose(got, ref, atol=2e-2, rtol=2e-2)), "matmul mismatch"

    # Unit check 2: sub-pixel ConvTranspose2d lowering (single-K path) vs ref.
    xt = jax.random.normal(k4, (2, 4, 4, 8), jnp.float32)
    wt = jax.random.normal(k5, (8, 5, 4, 4), jnp.float32) * 0.05
    bt = jax.random.normal(k6, (5,), jnp.float32) * 0.05
    got = conv_transpose_nhwc_pallas(xt, wt, bt, activation="none")
    ref = _conv_transpose_ref_nhwc(xt, wt, bt)
    assert got.shape == ref.shape == (2, 8, 8, 5)
    assert bool(jnp.allclose(got, ref, atol=3e-2, rtol=3e-2)), "convT mismatch"

    # Unit check 3: fused two-layer MLP head vs. plain bf16 reference.
    zz = jax.random.normal(k7, (8, z_dim), jnp.float32)
    w1t, b1t = _init_linear(k8, z_dim, 256)
    w2t, b2t = _init_linear(k1, 256, 512)
    got = fused_mlp_head_pallas(zz, w1t, b1t, w2t, b2t,
                                out_dtype=jnp.float32)
    h1 = jnp.dot(zz.astype(jnp.bfloat16), w1t,
                 preferred_element_type=jnp.float32) + b1t
    h1 = jnp.where(h1 > 0, h1, 0.01 * h1).astype(jnp.bfloat16)
    refh = jnp.dot(h1, w2t, preferred_element_type=jnp.float32) + b2t
    refh = jnp.where(refh > 0, refh, 0.01 * refh)
    assert bool(jnp.allclose(got, refh, atol=2e-2, rtol=2e-2)), "mlp-head mismatch"

    # Full Generator forward.
    params = init_generator_params(kp, z_dim, out_channels)
    z = jax.random.normal(kz, (batch, z_dim), dtype=jnp.float32)

    imgs = generator_forward(params, z)
    imgs = jax.block_until_ready(imgs)

    assert imgs.shape == (batch, out_channels, 64, 64), imgs.shape
    assert imgs.dtype == jnp.float32
    assert bool(jnp.all(jnp.isfinite(imgs)))
    print("KERNEL_OK")
</pallas_src>

<mosaic_0001>
module attributes {stable_mosaic.version = 11 : i64} {
  func.func @_matmul_bias_act_kernel(%arg0: i32, %arg1: i32, %arg2: i32, %arg3: memref<8x1152xbf16, #tpu.memory_space<vmem>>, %arg4: memref<1152x256xbf16, #tpu.memory_space<vmem>>, %arg5: memref<1x256xf32, #tpu.memory_space<vmem>>, %arg6: memref<8x256xf32, #tpu.memory_space<vmem>>, %arg7: memref<8x256xf32, #tpu.memory_space<vmem>>) attributes {dimension_semantics = [#tpu.dimension_semantics<parallel>, #tpu.dimension_semantics<parallel>, #tpu.dimension_semantics<arbitrary>], iteration_bounds = array<i64: 2, 1, 2>, scalar_prefetch = 0 : i64, scratch_operands = 1 : i64, tpu.core_type = #tpu.core_type<tc>, window_params = [{transform_indices = @transform_0, window_bounds = array<i64: 8, 1152>}, {transform_indices = @transform_1, window_bounds = array<i64: 1152, 256>}, {transform_indices = @transform_2, window_bounds = array<i64: 1, 256>}, {transform_indices = @transform_3, window_bounds = array<i64: 8, 256>}]} {
    %c0_i32 = arith.constant 0 : i32
    %0 = arith.cmpi eq, %arg2, %c0_i32 : i32
    %1 = arith.extui %0 : i1 to i32
    %c0_i32_0 = arith.constant 0 : i32
    %2 = arith.cmpi ne, %1, %c0_i32_0 : i32
    scf.if %2 {
      %c0_9 = arith.constant 0 : index
      %c0_10 = arith.constant 0 : index
      %12 = vector.load %arg5[%c0_9, %c0_10] : memref<1x256xf32, #tpu.memory_space<vmem>>, vector<1x256xf32>
      %13 = vector.shape_cast %12 : vector<1x256xf32> to vector<1x256xf32>
      %14 = vector.broadcast %13 : vector<1x256xf32> to vector<8x256xf32>
      %c0_11 = arith.constant 0 : index
      %c0_12 = arith.constant 0 : index
      %15 = vector.load %arg7[%c0_11, %c0_12] : memref<8x256xf32, #tpu.memory_space<vmem>>, vector<8x256xf32>
      tpu.vector_store %arg7[%c0_11, %c0_12], %14 {strides = array<i32>} : memref<8x256xf32, #tpu.memory_space<vmem>>, vector<8x256xf32>,
    } else {
    }
    %c0 = arith.constant 0 : index
    %c0_1 = arith.constant 0 : index
    %3 = vector.load %arg7[%c0, %c0_1] : memref<8x256xf32, #tpu.memory_space<vmem>>, vector<8x256xf32>
    %c0_2 = arith.constant 0 : index
    %c0_3 = arith.constant 0 : index
    %4 = vector.load %arg3[%c0_2, %c0_3] : memref<8x1152xbf16, #tpu.memory_space<vmem>>, vector<8x1152xbf16>
    %c0_4 = arith.constant 0 : index
    %c0_5 = arith.constant 0 : index
    %5 = vector.load %arg4[%c0_4, %c0_5] : memref<1152x256xbf16, #tpu.memory_space<vmem>>, vector<1152x256xbf16>
    %cst = arith.constant dense<0.000000e+00> : vector<8x256xf32>
    %6 = tpu.matmul %4, %5, %cst {dimension_numbers = #tpu.dot_dimension_numbers<[1], [0], [0], [1], [0, 0, 1, 1], [], []>} : vector<8x1152xbf16>, vector<1152x256xbf16>, vector<8x256xf32> -> vector<8x256xf32>
    %7 = arith.addf %3, %6 : vector<8x256xf32>
    %c0_6 = arith.constant 0 : index
    %c0_7 = arith.constant 0 : index
    %8 = vector.load %arg7[%c0_6, %c0_7] : memref<8x256xf32, #tpu.memory_space<vmem>>, vector<8x256xf32>
    tpu.vector_store %arg7[%c0_6, %c0_7], %7 {strides = array<i32>} : memref<8x256xf32, #tpu.memory_space<vmem>>, vector<8x256xf32>,
    %c1_i32 = arith.constant 1 : i32
    %9 = arith.cmpi eq, %arg2, %c1_i32 : i32
    %10 = arith.extui %9 : i1 to i32
    %c0_i32_8 = arith.constant 0 : i32
    %11 = arith.cmpi ne, %10, %c0_i32_8 : i32
    scf.if %11 {
      %c0_9 = arith.constant 0 : index
      %c0_10 = arith.constant 0 : index
      %12 = vector.load %arg7[%c0_9, %c0_10] : memref<8x256xf32, #tpu.memory_space<vmem>>, vector<8x256xf32>
      %c0_11 = arith.constant 0 : index
      %c0_12 = arith.constant 0 : index
      %13 = vector.load %arg6[%c0_11, %c0_12] : memref<8x256xf32, #tpu.memory_space<vmem>>, vector<8x256xf32>
      tpu.vector_store %arg6[%c0_11, %c0_12], %12 {strides = array<i32>} : memref<8x256xf32, #tpu.memory_space<vmem>>, vector<8x256xf32>,
    } else {
    }
    return
  }
  func.func @transform_0(%arg0: i32, %arg1: i32, %arg2: i32) -> (i32, i32) {
    %c0_i32 = arith.constant 0 : i32
    return %arg0, %arg2 : i32, i32
  }
  func.func @transform_1(%arg0: i32, %arg1: i32, %arg2: i32) -> (i32, i32) {
    %c0_i32 = arith.constant 0 : i32
    return %arg2, %arg1 : i32, i32
  }
  func.func @transform_2(%arg0: i32, %arg1: i32, %arg2: i32) -> (i32, i32) {
    %c0_i32 = arith.constant 0 : i32
    %c0_i32_0 = arith.constant 0 : i32
    return %c0_i32, %arg1 : i32, i32
  }
  func.func @transform_3(%arg0: i32, %arg1: i32, %arg2: i32) -> (i32, i32) {
    %c0_i32 = arith.constant 0 : i32
    return %arg0, %arg1 : i32, i32
  }
}

</mosaic_0001>

<bundles_post_ra>
// kernel: tpu_custom_call.1
= control target key start
LH: loop header
LB: loop body
LE: loop exit
PB: predicated region body
PF: predicated region fallthrough
CT: control target
= control target key end

     0   :  { %s2829_s0 = inlined_call_operand.hbm [shape: bf16[16,2304], index: 0, kind: input, shape index: {}]   ;;  %s2830_s1 = inlined_call_operand.hbm [shape: bf16[2304,256], index: 1, kind: input, shape index: {}]   ;;  %s2831_s2 = inlined_call_operand.hbm [shape: f32[1,256], index: 2, kind: input, shape index: {}]   ;;  %s2832_s3 = inlined_call_operand.hbm [shape: f32[16,256], index: 3, kind: output, shape index: {}]  }
   0x1   :  { %2844 = sst [smem:[#allocation25_spill]] %s2831_s2 }
   0x2   :  { %2845 = sst [smem:[#allocation26_spill]] %s2832_s3 }
   0x3   :  { %8 = vsyncpa [#allocation4], 0 }
   0x4   :  { %10 = vsyncpa [#allocation4 + $0x1], 0 }
   0x5   :  { %11 = vsyncpa [#allocation7], 0 }
   0x6   :  { %13 = vsyncpa [#allocation7 + $0x1], 0 }
   0x7   :  { %14 = vsyncpa [#allocation5], 0 }
   0x8   :  { %16 = vsyncpa [#allocation5 + $0x1], 0  ;;  %s2378_s12 = smov 0   ;;  %s2380_s13 = smov 0  }
   0x9   :  { %s2382_s14 = smov 0   ;;  %s2384_s15 = smov 0  }
   0xa   :  { %s2386_s16 = smov 0   ;;  %s2388_s17 = smov 0  }
   0xb   :  { %s2390_s18 = smov 0   ;;  %s2392_s19 = smov 0  }
   0xc   :  { %s2394_s20 = smov 0   ;;  %s2396_s21 = smov 0  }
   0xd   :  { %s2398_s22 = smov 0   ;;  %s2400_s23 = smov 0  }
   0xe   :  { %s2402_s24 = smov 0   ;;  %s2404_s25 = smov 0  }
   0xf LB: > { %2846 = sst [smem:[#allocation14_spill]] %s2297_s12  ;;  %s2445_s26 = sadd.s32 4294967295, %s2349_s25   ;;  %s2349_s25 = sphi %s2404_s25, %s22_s25   ;;  %s2345_s24 = sphi %s2402_s24, %s2885_s24   ;;  %s2341_s23 = sphi %s2400_s23, %s2895_s23   ;;  %s2337_s22 = sphi %s2398_s22, %s2883_s22   ;;  %s2333_s21 = sphi %s2396_s21, %s2894_s21   ;;  %s2329_s20 = sphi %s2394_s20, %s2882_s20   ;;  %s2325_s19 = sphi %s2392_s19, %s2893_s19   ;;  %s2321_s18 = sphi %s2390_s18, %s2892_s18   ;;  %s2317_s17 = sphi %s2388_s17, %s2891_s17   ;;  %s2313_s16 = sphi %s2386_s16, %s2890_s16   ;;  %s2309_s15 = sphi %s2384_s15, %s2889_s15   ;;  %s2305_s14 = sphi %s2382_s14, %s2888_s14   ;;  %s2301_s13 = sphi %s2380_s13, %s2887_s13   ;;  %s2297_s12 = sphi %s2378_s12, %s2886_s12  }
  0x10   : > { %2847 = sst [smem:[#allocation15_spill]] %s2329_s20  ;;  %s1566_s27 = sadd.s32 4294967294, %s2349_s25  }
  0x11   : > { %2848 = sst [smem:[#allocation16_spill]] %s2337_s22  ;;  %p63_p0 = scmp.ne.s32.totalorder %s2325_s19, %s2321_s18 }
  0x12   : > { %2849 = sst [smem:[#allocation17_spill]] %s2345_s24  ;;  %p64_p1 = scmp.eq.s32.totalorder %s2445_s26, 0 }
  0x13   : > { %p91_p3 = scmp.ne.s32.totalorder %s2313_s16, %s2309_s15  ;;  %p142_p6 = scmp.ne.s32.totalorder %s2305_s14, %s2301_s13 }
  0x14   : > { %p2455_p4 = por %p64_p1, %p63_p0  ;;  %p143_p7 = scmp.eq.s32.totalorder %s2445_s26, 3 }
  0x15   : > { %p2462_p5 = por %p91_p3, %p64_p1  ;;  %p148_p8 = scmp.ne.s32.totalorder %s2301_s13, %s2297_s12 }
  0x16   : > { %p149_p9 = scmp.eq.s32.totalorder %s1566_s27, 3  ;;  %p1567_p10 = scmp.ge.s32.totalorder %s2349_s25, 1 }
  0x17   : > { %s2851_s30 = scalar_select %p2462_p5, 1, 0 }
  0x18   : > { %p2472_p11 = por %p143_p7, %p142_p6  ;;  %p156_p12 = scmp.lt.s32.totalorder %s2349_s25, 5 }
  0x19   : > { %p2477_p13 = por %p149_p9, %p148_p8  ;;  %s2351_s7 = smov [#allocation8]  }
  0x1a   : > { %s2852_s4 = scalar_select %p2472_p11, 1, 0 }
  0x1b   : > { %s2854_s5 = scalar_select %p2477_p13, 1, 0 }
  0x1c   : > { %2853 = sst [smem:[#allocation18_spill]] %s2852_s4  ;;  %p2481_p0 = pnand %p1567_p10, %p156_p12 }
  0x1d   : > { %2855 = sst [smem:[#allocation19_spill]] %s2854_s5  ;;  %s172_s8 = sshll.u32 %s2351_s7, 4  ;;  %s173_s8 = int_to_ptr.vmem [resolvable:$true] %s172_s8 }
  0x1e   : > { %p1755_p3 = pneg %p2481_p0  ;;  %s2126_s9 = scalar_lea.vmem %s173_s8, 32 }
  0x1f   : > { %p2127_p2 = scmp.ne.s32.totalorder %s173_s8, %s2126_s9  ;;  %p2134_p9 = scmp.lt.s32.totalorder %s173_s8, %s173_s8 }
  0x20   : > { %p1756_p6 = pnand %p1755_p3, %p64_p1  ;;  %p2135_p5 = scmp.lt.s32.totalorder %s2126_s9, %s2126_s9 }
  0x22   : > { %p2117_p7 = pneg %p1756_p6  ;;  %p2136_p13 = por %p2135_p5, %p2134_p9 }
  0x24   : > { %p2129_p11 = pnand %p2127_p2, %p2117_p7 }
  0x26   : > { %p2130_p8 = pneg %p2129_p11 }
  0x28   : > { %p2137_p10 = pnand %p2136_p13, %p2130_p8 }
  0x2a   : > { %2140 = shalt.err (!%p2137_p10)
}
  0x2b   : > { %s2857_s2 = sld [smem:[#allocation25_spill]]  ;;  %s34_s15 = sadd.s32 1, %s2341_s23 }
  0x2c   : > { %s41_s18 = sadd.s32 1, %s2345_s24  ;;  %p35_p2 = scmp.ge.s32.totalorder %s34_s15, 2 }
  0x2d   : > { %s50_s27 = sadd.s32 1, %s2329_s20  ;;  %p57_p5 = scmp.ne.s32.totalorder %s2329_s20, %s2325_s19 }
  0x2e   : > { %p58_p11 = scmp.eq.s32.totalorder %s2349_s25, 0  ;;  %s2897_s15 = smov (%p35_p2, %s34_s15), 0 }
  0x2f   : > { %2858 = sst [smem:[#allocation20_spill]] %s2897_s15  ;;  %s2899_s18 = smov (!%p35_p2, %s41_s18), %s2345_s24 }
  0x30   : > { %s46_s7 = ssub.s32 %s2341_s23, %s2897_s15  ;;  %p2503_p12 = por %p58_p11, %p57_p5 }
  0x31   : > { %1758 = dma.hbm_to_vmem [thread:$0]  (!%p1756_p6), %s2857_s2, 32, %s173_s8, [#allocation7]  }
  0x32   : > { %p43_p13 = scmp.ge.s32.totalorder %s2899_s18, 2  ;;  %p76_p3 = scmp.eq.s32.totalorder %s46_s7, 0 }
  0x33   : > { %s78_s9 = sadd.s32 1, %s2317_s17  ;;  %p2860_p6 = scmp.ne.s32.totalorder %s2317_s17, %s2313_s16 }
  0x34   : > { %s2901_s18 = smov (%p43_p13, %s2899_s18), 0  ;;  %p1771_p8 = scmp.lt.s32.totalorder %s2349_s25, 4 }
  0x35   : > { %p2511_p7 = por %p2860_p6, %p58_p11  ;;  %2862 = sst [smem:[#allocation21_spill]] %s2901_s18 }
  0x36   : > { %s2518_s11 = scalar_select %p76_p3, %s2317_s17, %s78_s9  }
  0x37   : > { %s45_s29 = ssub.s32 %s2345_s24, %s2901_s18  ;;  %s183_s15 = sand.u32 1, %s2329_s20  }
  0x38   : > { %2863 = sst [smem:[#allocation22_spill]] %s2518_s11  ;;  %s47_s2 = sor.u32 %s46_s7, %s45_s29 }
  0x39   : > { %p130_p9 = scmp.eq.s32.totalorder %s45_s29, 0  ;;  %p48_p10 = scmp.eq.s32.totalorder %s47_s2, 0 }
  0x3a   : > { %s2864_s5 = sadd.s32 1, %s2305_s14  ;;  %s1740_s4 = smul.u32 36, %s183_s15 }
  0x3b   : > { %s2527_s12 = scalar_select %p130_p9, %s2305_s14, %s2864_s5  }
  0x3c   : > { %s2530_s3 = scalar_select %p48_p10, %s2329_s20, %s50_s27  }
  0x3d   : > { %2865 = sst [smem:[#allocation23_spill]] %s2527_s12  ;;  %s188_s22 = smul.u32 9, %s2341_s23 }
  0x3e   : > { %2866 = sst [smem:[#allocation24_spill]] %s2530_s3  ;;  %p2537_p2 = pnand %p1771_p8, %p2503_p12 }
  0x3f   : > { %s1741_s18 = smul.u32 18, %s2345_s24  ;;  %s187_s7 = scalar_lea.vmem [#allocation3], %s1740_s4 }
  0x40   : > { %s197_s29 = sshll.u32 %s187_s7, 4  ;;  %p2546_p5 = pnand %p1771_p8, %p2511_p7  ;;  %s198_s29 = int_to_ptr.vmem [resolvable:$true] %s197_s29 }
  0x41   : > { %s193_s11 = sadd.s32 %s1741_s18, %s188_s22  ;;  %s204_s20 = sand.u32 1, %s2349_s25  }
  0x42   : > { %s1570_s2 = sshll.u32 %s193_s11, 6  ;;  %s184_s12 = scalar_lea.sflag [#allocation4], %s183_s15 }
  0x43   : > { %s195_s3 = scalar_lea.hbm %s2829_s0, %s1570_s2  ;;  %p2143_p11 = pneg %p2537_p2 }
  0x44   : > { %s2154_s24 = scalar_lea.vmem %s198_s29, 576  ;;  %s2352_s22 = smov [#allocation3]  }
  0x45   : > { %p2155_p12 = scmp.ne.s32.totalorder %s198_s29, %s2154_s24  ;;  %s2159_s4 = sshll.u32 %s2352_s22, 4  ;;  %s2160_s4 = int_to_ptr.vmem [resolvable:$false] %s2159_s4 }
  0x46   : > { %s2161_s18 = scalar_lea.vmem %s2160_s4, 1152  ;;  %p2162_p6 = scmp.lt.s32.totalorder %s198_s29, %s2160_s4 }
  0x47   : > { %p2157_p13 = pnand %p2155_p12, %p2143_p11  ;;  %p2163_p7 = scmp.lt.s32.totalorder %s2161_s18, %s2154_s24 }
  0x49   : > { %p2158_p3 = pneg %p2157_p13  ;;  %p2164_p8 = por %p2163_p7, %p2162_p6 }
  0x4b   : > { %p2165_p9 = pnand %p2164_p8, %p2158_p3 }
  0x4d   : > { %2168 = shalt.err (!%p2165_p9)
}
  0x4e   : > { %1762 = dma.hbm_to_vmem [thread:$0]  (!%p2537_p2), %s195_s3, 576, %s198_s29, %s184_s12  }
  0x4f   : > { %s206_s15 = sand.u32 1, %s2317_s17   ;;  %s1739_s10 = smul.u32 18432, %s2341_s23 }
  0x50   : > { %s1742_s11 = smul.u32 1152, %s206_s15  ;;  %s205_s24 = scalar_lea.sflag [#allocation7], %s204_s20 }
  0x51   : > { %s217_s27 = scalar_lea.hbm %s2830_s1, %s1739_s10  ;;  %p2171_p10 = pneg %p2546_p5 }
  0x52   : > { %s208_s8 = scalar_lea.vmem [#allocation6], %s1742_s11  ;;  %s2353_s9 = smov [#allocation6]  }
  0x53   : > { %s218_s22 = sshll.u32 %s208_s8, 4  ;;  %s2187_s18 = sshll.u32 %s2353_s9, 4  ;;  %s219_s22 = int_to_ptr.vmem [resolvable:$true] %s218_s22  ;;  %s2188_s18 = int_to_ptr.vmem [resolvable:$false] %s2187_s18 }
  0x54   : > { %s2182_s4 = scalar_lea.vmem %s219_s22, 18432  ;;  %s2189_s3 = scalar_lea.vmem %s2188_s18, 36864 }
  0x55   : > { %p2183_p11 = scmp.ne.s32.totalorder %s219_s22, %s2182_s4  ;;  %p2190_p2 = scmp.lt.s32.totalorder %s219_s22, %s2188_s18 }
  0x56   : > { %p2191_p3 = scmp.lt.s32.totalorder %s2189_s3, %s2182_s4 }
  0x57   : > { %p2185_p12 = pnand %p2183_p11, %p2171_p10 }
  0x58   : > { %p2192_p6 = por %p2191_p3, %p2190_p2 }
  0x59   : > { %p2186_p13 = pneg %p2185_p12 }
  0x5b   : > { %p2193_p7 = pnand %p2192_p6, %p2186_p13 }
  0x5d   : > { %2196 = shalt.err (!%p2193_p7)
}
  0x5e   : > { %s2354_s12 = smov 128   ;;  %s2355_s29 = smov 8  }
  0x5f   : > { %1765 = dma.hbm_to_vmem [thread:$0]  (!%p2546_p5), %s217_s27, 18432, %s219_s22, %s205_s24, %s2354_s12, %s2354_s12, %s2355_s29  }
  0x60   : > { %230 = sbr.rel (%p2481_p0) target bundleno = 521 (0x209), region = 32  ;;  %s232_s20 = sand.u32 (!%p2481_p0), 1, %s2325_s19  }
  0x61   : > { %s1743_s15 = smul.u32 (!%p2481_p0), 36, %s232_s20  ;;  %s233_s10 = scalar_lea.sflag (!%p2481_p0), [#allocation4], %s232_s20 }
  0x63   : > { %s2570_s11 = scalar_lea.vmem (!%p2481_p0), [#allocation3], %s1743_s15 }
  0x65   : > { %2280 = dma.done.wait (%p2455_p4), %s233_s10, 576  }
  0x66   : > { %2282 = vsyncadd (%p2455_p4), %s233_s10, 4294966720  ;;  %s241_s5 = sand.u32 1, %s2445_s26   ;;  %s243_s7 = sand.u32 1, %s2313_s16  }
  0x67   : > { %s1744_s2 = smul.u32 1152, %s243_s7  ;;  %s242_s6 = scalar_lea.sflag [#allocation7], %s241_s5 }
  0x68   : > { %p2869_p0 = scmp.ne.s32.totalorder %s2851_s30, 0 }
  0x69   : > { %s2578_s27 = scalar_lea.vmem [#allocation6], %s1744_s2 }
  0x6a   : > { %2284 = dma.done.wait (%p2869_p0), %s242_s6, 18432  }
  0x6b   : > { %2286 = vsyncadd (%p2869_p0), %s242_s6, 4294948864 }
  0x6c   : > { %2288 = dma.done.wait (%p64_p1), [#allocation7], 32  }
  0x6d   : > { %2290 = vsyncadd (%p64_p1), [#allocation7], 4294967264  ;;  %s274_s28 = sand.u32 1, %s2301_s13   ;;  %p1576_p4 = scmp.ne.s32.totalorder %s2333_s21, 0 }
  0x6e   : > { %s1575_s8 = sshll.u32 %s274_s28, 4 }
  0x6f   : > { %s2591_s22 = scalar_lea.vmem [#allocation9], %s1575_s8  ;;  %286 = sbr.rel (%p1576_p4) target bundleno = 125 (0x7d), region = 48 }
  0x74   : > { %v289_v0 = vlaneseq  ;;  %v287_v2 = vld [vmem:[#allocation8] sm:$0x3] }
  0x76   : > { %v290_v1 = vshrl.u32 %v289_v0, 7 }
  0x78   : > { %v291_v3 = vsub.s32 0, %v290_v1  ;;  %v295_v4 = vsub.s32 1, %v290_v1 }
  0x7a   : > { %v292_v5 = vrot.slane %v287_v2, %v291_v3  ;;  %v296_v6 = vrot.slane %v287_v2, %v295_v4 }
  0x7c   : > { %299 = vst [vmem:[#allocation2] sm:$0xff] %v292_v5  ;;  %300 = vst [vmem:[#allocation2 + $0x8] sm:$0xff] %v296_v6 }
  0x7d PF: > { %v1890_v7 = vld [vmem:[%s2578_s27 + $0x74] ss:$8 sps:$4 sm:$0xff]   ;;  %v1894_v9 = vld [vmem:[%s2578_s27 + $0x70] ss:$8 sps:$4 sm:$0xff]   ;;  %v1896_v11 = vld [vmem:[%s2578_s27 + $0x64] ss:$8 sps:$4 sm:$0xff]  }
  0x7e   : > { %v1892_v8 = vld [vmem:[%s2578_s27 + $0x174] ss:$8 sps:$4 sm:$0xff]   ;;  %1204 = vmatprep.subr.bf16.mxu0 %v1890_v7  ;;  %v1895_v10 = vld [vmem:[%s2578_s27 + $0x170] ss:$8 sps:$4 sm:$0xff]   ;;  %v1898_v12 = vld [vmem:[%s2578_s27 + $0x164] ss:$8 sps:$4 sm:$0xff]  }
  0x7f   : > { %1245 = vmatprep.subr.bf16.mxu1 %v1892_v8  ;;  %1205 = vmatpush1.bf16.msra.mxu0 %v1894_v9  ;;  %v1900_v13 = vld [vmem:[%s2578_s27 + $0x60] ss:$8 sps:$4 sm:$0xff]   ;;  %v1902_v15 = vld [vmem:[%s2578_s27 + $0x54] ss:$8 sps:$4 sm:$0xff]   ;;  %v1906_v17 = vld [vmem:[%s2578_s27 + $0x50] ss:$8 sps:$4 sm:$0xff]  }
  0x80   : > { %1246 = vmatpush1.bf16.msra.mxu1 %v1895_v10  ;;  %1206 = vmatprep.subr.bf16.mxu0 %v1896_v11  ;;  %v1901_v14 = vld [vmem:[%s2578_s27 + $0x160] ss:$8 sps:$4 sm:$0xff]   ;;  %v1904_v16 = vld [vmem:[%s2578_s27 + $0x154] ss:$8 sps:$4 sm:$0xff]   ;;  %v1907_v18 = vld [vmem:[%s2578_s27 + $0x150] ss:$8 sps:$4 sm:$0xff]  }
  0x81   : > { %1247 = vmatprep.subr.bf16.mxu1 %v1898_v12  ;;  %v1908_v19 = vld [vmem:[%s2578_s27 + $0x44] ss:$8 sps:$4 sm:$0xff]   ;;  %v1912_v21 = vld [vmem:[%s2578_s27 + $0x40] ss:$8 sps:$4 sm:$0xff]   ;;  %v1914_v23 = vld [vmem:[%s2578_s27 + $0x34] ss:$8 sps:$4 sm:$0xff]  }
  0x82   : > { %v1910_v20 = vld [vmem:[%s2578_s27 + $0x144] ss:$8 sps:$4 sm:$0xff]   ;;  %v1913_v22 = vld [vmem:[%s2578_s27 + $0x140] ss:$8 sps:$4 sm:$0xff]   ;;  %v1916_v24 = vld [vmem:[%s2578_s27 + $0x134] ss:$8 sps:$4 sm:$0xff]  }
  0x83   : > { %1207 = vmatpush1.bf16.msra.mxu0 %v1900_v13  ;;  %v1918_v25 = vld [vmem:[%s2578_s27 + $0x30] ss:$8 sps:$4 sm:$0xff]   ;;  %v1920_v27 = vld [vmem:[%s2578_s27 + $0x24] ss:$8 sps:$4 sm:$0xff]   ;;  %v1924_v29 = vld [vmem:[%s2578_s27 + $0x20] ss:$8 sps:$4 sm:$0xff]  }
  0x84   : > { %1248 = vmatpush1.bf16.msra.mxu1 %v1901_v14  ;;  %1208 = vmatprep.subr.bf16.mxu0 %v1902_v15  ;;  %v1919_v26 = vld [vmem:[%s2578_s27 + $0x130] ss:$8 sps:$4 sm:$0xff]   ;;  %v1922_v28 = vld [vmem:[%s2578_s27 + $0x124] ss:$8 sps:$4 sm:$0xff]   ;;  %v1925_v30 = vld [vmem:[%s2578_s27 + $0x120] ss:$8 sps:$4 sm:$0xff]  }
  0x85   : > { %1249 = vmatprep.subr.bf16.mxu1 %v1904_v16  ;;  %v1926_v31 = vld [vmem:[%s2578_s27 + $0x14] ss:$8 sps:$4 sm:$0xff]   ;;  %v1930_v33 = vld [vmem:[%s2578_s27 + $0x10] ss:$8 sps:$4 sm:$0xff]   ;;  %v1932_v35 = vld [vmem:[%s2578_s27 + $0x4] ss:$8 sps:$4 sm:$0xff]  }
  0x86   : > { %v1928_v32 = vld [vmem:[%s2578_s27 + $0x114] ss:$8 sps:$4 sm:$0xff]   ;;  %v1931_v34 = vld [vmem:[%s2578_s27 + $0x110] ss:$8 sps:$4 sm:$0xff]   ;;  %v1934_v36 = vld [vmem:[%s2578_s27 + $0x104] ss:$8 sps:$4 sm:$0xff]  }
  0x87   : > { %1209 = vmatpush1.bf16.msra.mxu0 %v1906_v17  ;;  %v1936_v37 = vld [vmem:[%s2578_s27] ss:$8 sps:$4 sm:$0xff]   ;;  %v1938_v39 = vld [vmem:[%s2578_s27 + $0xf4] ss:$8 sps:$4 sm:$0xff]   ;;  %v1942_v41 = vld [vmem:[%s2578_s27 + $0xf0] ss:$8 sps:$4 sm:$0xff]  }
  0x88   : > { %1250 = vmatpush1.bf16.msra.mxu1 %v1907_v18  ;;  %1210 = vmatprep.subr.bf16.mxu0 %v1908_v19  ;;  %v1937_v38 = vld [vmem:[%s2578_s27 + $0x100] ss:$8 sps:$4 sm:$0xff]   ;;  %v1940_v40 = vld [vmem:[%s2578_s27 + $0x1f4] ss:$8 sps:$4 sm:$0xff]   ;;  %v1943_v42 = vld [vmem:[%s2578_s27 + $0x1f0] ss:$8 sps:$4 sm:$0xff]  }
  0x89   : > { %1251 = vmatprep.subr.bf16.mxu1 %v1910_v20  ;;  %v1944_v43 = vld [vmem:[%s2578_s27 + $0xe4] ss:$8 sps:$4 sm:$0xff]   ;;  %v1948_v45 = vld [vmem:[%s2578_s27 + $0xe0] ss:$8 sps:$4 sm:$0xff]   ;;  %v1950_v47 = vld [vmem:[%s2578_s27 + $0xd4] ss:$8 sps:$4 sm:$0xff]  }
  0x8a   : > { %v1946_v44 = vld [vmem:[%s2578_s27 + $0x1e4] ss:$8 sps:$4 sm:$0xff]   ;;  %v1949_v46 = vld [vmem:[%s2578_s27 + $0x1e0] ss:$8 sps:$4 sm:$0xff]   ;;  %v1952_v48 = vld [vmem:[%s2578_s27 + $0x1d4] ss:$8 sps:$4 sm:$0xff]  }
  0x8b   : > { %1211 = vmatpush1.bf16.msra.mxu0 %v1912_v21  ;;  %v1954_v49 = vld [vmem:[%s2578_s27 + $0xd0] ss:$8 sps:$4 sm:$0xff]   ;;  %v1956_v51 = vld [vmem:[%s2578_s27 + $0xc4] ss:$8 sps:$4 sm:$0xff]   ;;  %v1960_v56 = vld [vmem:[%s2578_s27 + $0xc0] ss:$8 sps:$4 sm:$0xff]  }
  0x8c   : > { %1252 = vmatpush1.bf16.msra.mxu1 %v1913_v22  ;;  %1212 = vmatprep.subr.bf16.mxu0 %v1914_v23  ;;  %v1955_v50 = vld [vmem:[%s2578_s27 + $0x1d0] ss:$8 sps:$4 sm:$0xff]   ;;  %v1958_v52 = vld [vmem:[%s2578_s27 + $0x1c4] ss:$8 sps:$4 sm:$0xff]   ;;  %v1961_v57 = vld [vmem:[%s2578_s27 + $0x1c0] ss:$8 sps:$4 sm:$0xff]  }
  0x8d   : > { %1253 = vmatprep.subr.bf16.mxu1 %v1916_v24  ;;  %v303_v53 = vld [vmem:[%s2570_s11] sm:$0xff]  ;;  %v304_v55 = vld [vmem:[%s2570_s11 + $0x8] sm:$0xff]  ;;  %p1730_p1 = scmp.ne.s32.totalorder %s2333_s21, 1 }
  0x8e   : > { %v1578_v54 = vcombine.high %v303_v53, %v303_v53  ;;  %v1580_v58 = vcombine.high %v304_v55, %v304_v55  ;;  %v1962_v59 = vld [vmem:[%s2578_s27 + $0xb4] ss:$8 sps:$4 sm:$0xff]   ;;  %v1966_v61 = vld [vmem:[%s2578_s27 + $0xb0] ss:$8 sps:$4 sm:$0xff]   ;;  %v1968_v63 = vld [vmem:[%s2578_s27 + $0xa4] ss:$8 sps:$4 sm:$0xff]   ;;  %v1577_v13 = vcombine.low %v303_v53, %v303_v53  ;;  %v1579_v14 = vcombine.low %v304_v55, %v304_v55 }
  0x8f   : > { %1213 = vmatpush1.bf16.msra.mxu0 %v1918_v25  ;;  %v1964_v60 = vld [vmem:[%s2578_s27 + $0x1b4] ss:$8 sps:$4 sm:$0xff]   ;;  %v1967_v62 = vld [vmem:[%s2578_s27 + $0x1b0] ss:$8 sps:$4 sm:$0xff]   ;;  %v1970_v0 = vld [vmem:[%s2578_s27 + $0x1a4] ss:$8 sps:$4 sm:$0xff]  }
  0x90   : > { %1254 = vmatpush1.bf16.msra.mxu1 %v1919_v26  ;;  %1214 = vmatprep.subr.bf16.mxu0 %v1920_v27  ;;  %v1972_v1 = vld [vmem:[%s2578_s27 + $0xa0] ss:$8 sps:$4 sm:$0xff]   ;;  %v1974_v3 = vld [vmem:[%s2578_s27 + $0x94] ss:$8 sps:$4 sm:$0xff]   ;;  %v1978_v5 = vld [vmem:[%s2578_s27 + $0x90] ss:$8 sps:$4 sm:$0xff]  }
  0x91   : > { %1255 = vmatprep.subr.bf16.mxu1 %v1922_v28  ;;  %1236 = vmatprep.mubr.bf16.mxu0 %v1578_v54  ;;  %v1973_v2 = vld [vmem:[%s2578_s27 + $0x1a0] ss:$8 sps:$4 sm:$0xff]   ;;  %v1976_v4 = vld [vmem:[%s2578_s27 + $0x194] ss:$8 sps:$4 sm:$0xff]   ;;  %v1979_v6 = vld [vmem:[%s2578_s27 + $0x190] ss:$8 sps:$4 sm:$0xff]  }
  0x92   : > { %1277 = vmatprep.mubr.bf16.mxu1 %v1580_v58  ;;  %v1980_v7 = vld [vmem:[%s2578_s27 + $0x84] ss:$8 sps:$4 sm:$0xff]   ;;  %v1984_v9 = vld [vmem:[%s2578_s27 + $0x80] ss:$8 sps:$4 sm:$0xff]   ;;  %v1992_v11 = vld [vmem:[%s2578_s27 + $0x274] ss:$8 sps:$4 sm:$0xff]  }
  0x93   : > { %1215 = vmatpush1.bf16.msra.mxu0 %v1924_v29  ;;  %v1982_v8 = vld [vmem:[%s2578_s27 + $0x184] ss:$8 sps:$4 sm:$0xff]   ;;  %v1985_v10 = vld [vmem:[%s2578_s27 + $0x180] ss:$8 sps:$4 sm:$0xff]   ;;  %v1995_v12 = vld [vmem:[%s2578_s27 + $0x374] ss:$8 sps:$4 sm:$0xff]  }
  0x94   : > { %1256 = vmatpush1.bf16.msra.mxu1 %v1925_v30  ;;  %1216 = vmatprep.subr.bf16.mxu0 %v1926_v31  ;;  %v1990_v15 = vld [vmem:[%s2578_s27 + $0x270] ss:$8 sps:$4 sm:$0xff]   ;;  %v1998_v17 = vld [vmem:[%s2578_s27 + $0x264] ss:$8 sps:$4 sm:$0xff]   ;;  %v1996_v19 = vld [vmem:[%s2578_s27 + $0x260] ss:$8 sps:$4 sm:$0xff]  }
  0x95   : > { %1257 = vmatprep.subr.bf16.mxu1 %v1928_v32  ;;  %v1993_v16 = vld [vmem:[%s2578_s27 + $0x370] ss:$8 sps:$4 sm:$0xff]   ;;  %v2001_v18 = vld [vmem:[%s2578_s27 + $0x364] ss:$8 sps:$4 sm:$0xff]   ;;  %v1999_v20 = vld [vmem:[%s2578_s27 + $0x360] ss:$8 sps:$4 sm:$0xff]  }
  0x96   : > { %v2004_v21 = vld [vmem:[%s2578_s27 + $0x254] ss:$8 sps:$4 sm:$0xff]   ;;  %v2002_v23 = vld [vmem:[%s2578_s27 + $0x250] ss:$8 sps:$4 sm:$0xff]   ;;  %v2010_v25 = vld [vmem:[%s2578_s27 + $0x244] ss:$8 sps:$4 sm:$0xff]  }
  0x97   : > { %1217 = vmatpush1.bf16.msra.mxu0 %v1930_v33  ;;  %v2007_v22 = vld [vmem:[%s2578_s27 + $0x354] ss:$8 sps:$4 sm:$0xff]   ;;  %v2005_v24 = vld [vmem:[%s2578_s27 + $0x350] ss:$8 sps:$4 sm:$0xff]   ;;  %v2013_v26 = vld [vmem:[%s2578_s27 + $0x344] ss:$8 sps:$4 sm:$0xff]  }
  0x98   : > { %1258 = vmatpush1.bf16.msra.mxu1 %v1931_v34  ;;  %1218 = vmatprep.subr.bf16.mxu0 %v1932_v35  ;;  %v2008_v27 = vld [vmem:[%s2578_s27 + $0x240] ss:$8 sps:$4 sm:$0xff]   ;;  %v2016_v29 = vld [vmem:[%s2578_s27 + $0x234] ss:$8 sps:$4 sm:$0xff]   ;;  %v2014_v31 = vld [vmem:[%s2578_s27 + $0x230] ss:$8 sps:$4 sm:$0xff]  }
  0x99   : > { %1259 = vmatprep.subr.bf16.mxu1 %v1934_v36  ;;  %v2011_v28 = vld [vmem:[%s2578_s27 + $0x340] ss:$8 sps:$4 sm:$0xff]   ;;  %v2019_v30 = vld [vmem:[%s2578_s27 + $0x334] ss:$8 sps:$4 sm:$0xff]   ;;  %v2017_v32 = vld [vmem:[%s2578_s27 + $0x330] ss:$8 sps:$4 sm:$0xff]  }
  0x9a   : > { %v2022_v33 = vld [vmem:[%s2578_s27 + $0x224] ss:$8 sps:$4 sm:$0xff]   ;;  %v2020_v35 = vld [vmem:[%s2578_s27 + $0x220] ss:$8 sps:$4 sm:$0xff]   ;;  %v2055_v58 = vld [vmem:[%s2578_s27 + $0x3d4] ss:$8 sps:$4 sm:$0xff]  }
  0x9b   : > { %1219 = vmatpush1.bf16.msra.mxu0 %v1936_v37  ;;  %v2025_v34 = vld [vmem:[%s2578_s27 + $0x324] ss:$8 sps:$4 sm:$0xff]   ;;  %v2023_v36 = vld [vmem:[%s2578_s27 + $0x320] ss:$8 sps:$4 sm:$0xff]   ;;  %v2028_v37 = vld [vmem:[%s2578_s27 + $0x214] ss:$8 sps:$4 sm:$0xff]  }
  0x9c   : > { %1260 = vmatpush1.bf16.msra.mxu1 %v1937_v38  ;;  %1220 = vmatprep.subr.bf16.mxu0 %v1938_v39  ;;  %v2031_v38 = vld [vmem:[%s2578_s27 + $0x314] ss:$8 sps:$4 sm:$0xff]   ;;  %v2687_v39 = vld [vmem:[%s2570_s11 + $0x10] sm:$0xff] }
  0x9d   : > { %1261 = vmatprep.subr.bf16.mxu1 %v1940_v40  ;;  %v2026_v40 = vld [vmem:[%s2578_s27 + $0x210] ss:$8 sps:$4 sm:$0xff]   ;;  %v2046_v53 = vld [vmem:[%s2578_s27 + $0x2e4] ss:$8 sps:$4 sm:$0xff]   ;;  %v2044_v55 = vld [vmem:[%s2578_s27 + $0x2e0] ss:$8 sps:$4 sm:$0xff]  }
  0x9e   : > { %v2049_v54 = vld [vmem:[%s2578_s27 + $0x3e4] ss:$8 sps:$4 sm:$0xff]  }
  0x9f   : > { %1221 = vmatpush2.bf16.msra.mxu0 %v1942_v41  ;;  %v2029_v41 = vld [vmem:[%s2578_s27 + $0x310] ss:$8 sps:$4 sm:$0xff]  }
  0xa0   : > { %1262 = vmatpush2.bf16.msra.mxu1 %v1943_v42  ;;  %1222 = vmatprep.subr.bf16.mxu0 %v1944_v43  ;;  %v1582_v42 = vcombine.high %v2687_v39, %v2687_v39  ;;  %v2694_v43 = vld [vmem:[%s2570_s11 + $0x18] sm:$0xff] }
  0xa1   : > { %1263 = vmatprep.subr.bf16.mxu1 %v1946_v44  ;;  %v2034_v44 = vld [vmem:[%s2578_s27 + $0x204] ss:$8 sps:$4 sm:$0xff]  }
  0xa3   : > { %1223 = vmatpush2.bf16.msra.mxu0 %v1948_v45  ;;  %v1584_v45 = vcombine.high %v2694_v43, %v2694_v43 }
  0xa4   : > { %1264 = vmatpush2.bf16.msra.mxu1 %v1949_v46  ;;  %1224 = vmatprep.subr.bf16.mxu0 %v1950_v47  ;;  %v2037_v46 = vld [vmem:[%s2578_s27 + $0x304] ss:$8 sps:$4 sm:$0xff]   ;;  %v2032_v47 = vld [vmem:[%s2578_s27 + $0x200] ss:$8 sps:$4 sm:$0xff]  }
  0xa5   : > { %1265 = vmatprep.subr.bf16.mxu1 %v1952_v48  ;;  %v2035_v48 = vld [vmem:[%s2578_s27 + $0x300] ss:$8 sps:$4 sm:$0xff]  }
  0xa7   : > { %1225 = vmatpush2.bf16.msra.mxu0 %v1954_v49  ;;  %v2040_v49 = vld [vmem:[%s2578_s27 + $0x2f4] ss:$8 sps:$4 sm:$0xff]  }
  0xa8   : > { %1266 = vmatpush2.bf16.msra.mxu1 %v1955_v50  ;;  %1226 = vmatprep.subr.bf16.mxu0 %v1956_v51  ;;  %v2043_v50 = vld [vmem:[%s2578_s27 + $0x3f4] ss:$8 sps:$4 sm:$0xff]   ;;  %v2038_v51 = vld [vmem:[%s2578_s27 + $0x2f0] ss:$8 sps:$4 sm:$0xff]  }
  0xa9   : > { %1267 = vmatprep.subr.bf16.mxu1 %v1958_v52  ;;  %v2041_v52 = vld [vmem:[%s2578_s27 + $0x3f0] ss:$8 sps:$4 sm:$0xff]  }
  0xab   : > { %1227 = vmatpush2.bf16.msra.mxu0 %v1960_v56  ;;  %v2047_v56 = vld [vmem:[%s2578_s27 + $0x3e0] ss:$8 sps:$4 sm:$0xff]  }
  0xac   : > { %1268 = vmatpush2.bf16.msra.mxu1 %v1961_v57  ;;  %1228 = vmatprep.subr.bf16.mxu0 %v1962_v59  ;;  %v2052_v57 = vld [vmem:[%s2578_s27 + $0x2d4] ss:$8 sps:$4 sm:$0xff]   ;;  %v2050_v59 = vld [vmem:[%s2578_s27 + $0x2d0] ss:$8 sps:$4 sm:$0xff]  }
  0xad   : > { %1269 = vmatprep.subr.bf16.mxu1 %v1964_v60  ;;  %v2053_v60 = vld [vmem:[%s2578_s27 + $0x3d0] ss:$8 sps:$4 sm:$0xff]  }
  0xaf   : > { %1229 = vmatpush2.bf16.msra.mxu0 %v1966_v61  ;;  %v2058_v61 = vld [vmem:[%s2578_s27 + $0x2c4] ss:$8 sps:$4 sm:$0xff]  }
  0xb0   : > { %1270 = vmatpush2.bf16.msra.mxu1 %v1967_v62  ;;  %1230 = vmatprep.subr.bf16.mxu0 %v1968_v63  ;;  %v2061_v62 = vld [vmem:[%s2578_s27 + $0x3c4] ss:$8 sps:$4 sm:$0xff]   ;;  %v2056_v63 = vld [vmem:[%s2578_s27 + $0x2c0] ss:$8 sps:$4 sm:$0xff]  }
  0xb1   : > { %1271 = vmatprep.subr.bf16.mxu1 %v1970_v0  ;;  %v2059_v0 = vld [vmem:[%s2578_s27 + $0x3c0] ss:$8 sps:$4 sm:$0xff]  }
  0xb3   : > { %1231 = vmatpush2.bf16.msra.mxu0 %v1972_v1  ;;  %v2064_v1 = vld [vmem:[%s2578_s27 + $0x2b4] ss:$8 sps:$4 sm:$0xff]  }
  0xb4   : > { %1272 = vmatpush2.bf16.msra.mxu1 %v1973_v2  ;;  %1232 = vmatprep.subr.bf16.mxu0 %v1974_v3  ;;  %v2067_v2 = vld [vmem:[%s2578_s27 + $0x3b4] ss:$8 sps:$4 sm:$0xff]   ;;  %v2062_v3 = vld [vmem:[%s2578_s27 + $0x2b0] ss:$8 sps:$4 sm:$0xff]  }
  0xb5   : > { %1273 = vmatprep.subr.bf16.mxu1 %v1976_v4  ;;  %v2065_v4 = vld [vmem:[%s2578_s27 + $0x3b0] ss:$8 sps:$4 sm:$0xff]  }
  0xb7   : > { %1233 = vmatpush2.bf16.msra.mxu0 %v1978_v5  ;;  %v2070_v5 = vld [vmem:[%s2578_s27 + $0x2a4] ss:$8 sps:$4 sm:$0xff]  }
  0xb8   : > { %1274 = vmatpush2.bf16.msra.mxu1 %v1979_v6  ;;  %1234 = vmatprep.subr.bf16.mxu0 %v1980_v7  ;;  %v2073_v6 = vld [vmem:[%s2578_s27 + $0x3a4] ss:$8 sps:$4 sm:$0xff]   ;;  %v2068_v7 = vld [vmem:[%s2578_s27 + $0x2a0] ss:$8 sps:$4 sm:$0xff]  }
  0xb9   : > { %1275 = vmatprep.subr.bf16.mxu1 %v1982_v8  ;;  %v2071_v8 = vld [vmem:[%s2578_s27 + $0x3a0] ss:$8 sps:$4 sm:$0xff]  }
  0xbb   : > { %1235 = vmatpush2.bf16.msra.mxu0 %v1984_v9  ;;  %v2076_v9 = vld [vmem:[%s2578_s27 + $0x294] ss:$8 sps:$4 sm:$0xff]  }
  0xbc   : > { %1276 = vmatpush2.bf16.msra.mxu1 %v1985_v10  ;;  %1286 = vmatprep.subr.bf16.mxu0 %v1992_v11  ;;  %v2079_v10 = vld [vmem:[%s2578_s27 + $0x394] ss:$8 sps:$4 sm:$0xff]   ;;  %v2074_v11 = vld [vmem:[%s2578_s27 + $0x290] ss:$8 sps:$4 sm:$0xff]  }
  0xbd   : > { %1327 = vmatprep.subr.bf16.mxu1 %v1995_v12  ;;  %v2077_v12 = vld [vmem:[%s2578_s27 + $0x390] ss:$8 sps:$4 sm:$0xff]  }
  0xbe   : > { %1237 = vmatmul.mubr.bf16.vlgmr.msra.gmra.mxu0 %v1577_v13  ;;  %v2082_v13 = vld [vmem:[%s2578_s27 + $0x284] ss:$8 sps:$4 sm:$0xff]  }
  0xbf   : > { %1278 = vmatmul.mubr.bf16.vlgmr.msra.gmra.mxu1 %v1579_v14  ;;  %1287 = vmatpush1.bf16.msra.mxu0 %v1990_v15  ;;  %v2085_v14 = vld [vmem:[%s2578_s27 + $0x384] ss:$8 sps:$4 sm:$0xff]   ;;  %v2080_v15 = vld [vmem:[%s2578_s27 + $0x280] ss:$8 sps:$4 sm:$0xff]  }
  0xc0   : > { %1328 = vmatpush1.bf16.msra.mxu1 %v1993_v16  ;;  %1288 = vmatprep.subr.bf16.mxu0 %v1998_v17  ;;  %v2083_v16 = vld [vmem:[%s2578_s27 + $0x380] ss:$8 sps:$4 sm:$0xff]   ;;  %v2090_v17 = vld [vmem:[%s2578_s27 + $0x474] ss:$8 sps:$4 sm:$0xff]  }
  0xc1   : > { %1329 = vmatprep.subr.bf16.mxu1 %v2001_v18  ;;  %1318 = vmatprep.mubr.bf16.mxu0 %v1582_v42  ;;  %v1581_v18 = vcombine.low %v2687_v39, %v2687_v39 }
  0xc2   : > { %1359 = vmatprep.mubr.bf16.mxu1 %v1584_v45 }
  0xc3   : > { %1289 = vmatpush1.bf16.msra.mxu0 %v1996_v19  ;;  %v1583_v19 = vcombine.low %v2694_v43, %v2694_v43 }
  0xc4   : > { %1330 = vmatpush1.bf16.msra.mxu1 %v1999_v20  ;;  %1290 = vmatprep.subr.bf16.mxu0 %v2004_v21  ;;  %v2088_v20 = vld [vmem:[%s2578_s27 + $0x470] ss:$8 sps:$4 sm:$0xff]   ;;  %v2095_v21 = vld [vmem:[%s2578_s27 + $0x464] ss:$8 sps:$4 sm:$0xff]  }
  0xc5   : > { %1331 = vmatprep.subr.bf16.mxu1 %v2007_v22  ;;  %v2093_v22 = vld [vmem:[%s2578_s27 + $0x460] ss:$8 sps:$4 sm:$0xff]  }
  0xc7   : > { %1291 = vmatpush1.bf16.msra.mxu0 %v2002_v23  ;;  %v2356_v23 = vmov 0  }
  0xc8   : > { %1332 = vmatpush1.bf16.msra.mxu1 %v2005_v24  ;;  %1292 = vmatprep.subr.bf16.mxu0 %v2010_v25  ;;  %v2098_v24 = vld [vmem:[%s2578_s27 + $0x454] ss:$8 sps:$4 sm:$0xff]   ;;  %v2096_v25 = vld [vmem:[%s2578_s27 + $0x450] ss:$8 sps:$4 sm:$0xff]  }
  0xc9   : > { %1333 = vmatprep.subr.bf16.mxu1 %v2013_v26  ;;  %v2101_v26 = vld [vmem:[%s2578_s27 + $0x444] ss:$8 sps:$4 sm:$0xff]  }
  0xcb   : > { %1293 = vmatpush1.bf16.msra.mxu0 %v2008_v27  ;;  %v2099_v27 = vld [vmem:[%s2578_s27 + $0x440] ss:$8 sps:$4 sm:$0xff]  }
  0xcc   : > { %1334 = vmatpush1.bf16.msra.mxu1 %v2011_v28  ;;  %1294 = vmatprep.subr.bf16.mxu0 %v2016_v29  ;;  %v2104_v28 = vld [vmem:[%s2578_s27 + $0x434] ss:$8 sps:$4 sm:$0xff]   ;;  %v2102_v29 = vld [vmem:[%s2578_s27 + $0x430] ss:$8 sps:$4 sm:$0xff]  }
  0xcd   : > { %1335 = vmatprep.subr.bf16.mxu1 %v2019_v30  ;;  %v2107_v30 = vld [vmem:[%s2578_s27 + $0x424] ss:$8 sps:$4 sm:$0xff]  }
  0xcf   : > { %1295 = vmatpush1.bf16.msra.mxu0 %v2014_v31  ;;  %v2105_v31 = vld [vmem:[%s2578_s27 + $0x420] ss:$8 sps:$4 sm:$0xff]  }
  0xd0   : > { %1336 = vmatpush1.bf16.msra.mxu1 %v2017_v32  ;;  %1296 = vmatprep.subr.bf16.mxu0 %v2022_v33  ;;  %v2110_v32 = vld [vmem:[%s2578_s27 + $0x414] ss:$8 sps:$4 sm:$0xff]   ;;  %v2108_v33 = vld [vmem:[%s2578_s27 + $0x410] ss:$8 sps:$4 sm:$0xff]  }
  0xd1   : > { %1337 = vmatprep.subr.bf16.mxu1 %v2025_v34  ;;  %v2113_v34 = vld [vmem:[%s2578_s27 + $0x404] ss:$8 sps:$4 sm:$0xff]  }
  0xd3   : > { %1297 = vmatpush1.bf16.msra.mxu0 %v2020_v35  ;;  %v2111_v35 = vld [vmem:[%s2578_s27 + $0x400] ss:$8 sps:$4 sm:$0xff]  }
  0xd4   : > { %1338 = vmatpush1.bf16.msra.mxu1 %v2023_v36  ;;  %1298 = vmatprep.subr.bf16.mxu0 %v2028_v37  ;;  %v2114_v36 = vld [vmem:[%s2570_s11 + $0x20] ss:$0 sps:$4 sm:$0xff]  }
  0xd5   : > { %1339 = vmatprep.subr.bf16.mxu1 %v2031_v38 }
  0xd7   : > { %1299 = vmatpush1.bf16.msra.mxu0 %v2026_v40 }
  0xd8   : > { %1340 = vmatpush1.bf16.msra.mxu1 %v2029_v41  ;;  %1300 = vmatprep.subr.bf16.mxu0 %v2034_v44 }
  0xd9   : > { %1341 = vmatprep.subr.bf16.mxu1 %v2037_v46 }
  0xdb   : > { %1301 = vmatpush1.bf16.msra.mxu0 %v2032_v47 }
  0xdc   : > { %1342 = vmatpush1.bf16.msra.mxu1 %v2035_v48  ;;  %1302 = vmatprep.subr.bf16.mxu0 %v2040_v49 }
  0xdd   : > { %1343 = vmatprep.subr.bf16.mxu1 %v2043_v50 }
  0xdf   : > { %1303 = vmatpush2.bf16.msra.mxu0 %v2038_v51 }
  0xe0   : > { %1344 = vmatpush2.bf16.msra.mxu1 %v2041_v52  ;;  %1304 = vmatprep.subr.bf16.mxu0 %v2046_v53 }
  0xe1   : > { %1345 = vmatprep.subr.bf16.mxu1 %v2049_v54 }
  0xe3   : > { %1305 = vmatpush2.bf16.msra.mxu0 %v2044_v55 }
  0xe4   : > { %1346 = vmatpush2.bf16.msra.mxu1 %v2047_v56  ;;  %1306 = vmatprep.subr.bf16.mxu0 %v2052_v57 }
  0xe5   : > { %1347 = vmatprep.subr.bf16.mxu1 %v2055_v58  ;;  %v301_v58 = vld [vmem:[#allocation2] sm:$0xff] }
  0xe7   : > { %1307 = vmatpush2.bf16.msra.mxu0 %v2050_v59 }
  0xe8   : > { %1348 = vmatpush2.bf16.msra.mxu1 %v2053_v60  ;;  %1308 = vmatprep.subr.bf16.mxu0 %v2058_v61 }
  0xe9   : > { %1349 = vmatprep.subr.bf16.mxu1 %v2061_v62  ;;  %v302_v62 = vld [vmem:[#allocation2 + $0x8] sm:$0xff] }
  0xeb   : > { %1309 = vmatpush2.bf16.msra.mxu0 %v2056_v63 }
  0xec   : > { %1350 = vmatpush2.bf16.msra.mxu1 %v2059_v0  ;;  %1310 = vmatprep.subr.bf16.mxu0 %v2064_v1 }
  0xed   : > { %1351 = vmatprep.subr.bf16.mxu1 %v2067_v2 }
  0xef   : > { %1311 = vmatpush2.bf16.msra.mxu0 %v2062_v3 }
  0xf0   : > { %1352 = vmatpush2.bf16.msra.mxu1 %v2065_v4  ;;  %1312 = vmatprep.subr.bf16.mxu0 %v2070_v5 }
  0xf1   : > { %1353 = vmatprep.subr.bf16.mxu1 %v2073_v6 }
  0xf3   : > { %1313 = vmatpush2.bf16.msra.mxu0 %v2068_v7 }
  0xf4   : > { %1354 = vmatpush2.bf16.msra.mxu1 %v2071_v8  ;;  %1314 = vmatprep.subr.bf16.mxu0 %v2076_v9 }
  0xf5   : > { %1355 = vmatprep.subr.bf16.mxu1 %v2079_v10 }
  0xf7   : > { %1315 = vmatpush2.bf16.msra.mxu0 %v2074_v11 }
  0xf8   : > { %1356 = vmatpush2.bf16.msra.mxu1 %v2077_v12  ;;  %1316 = vmatprep.subr.bf16.mxu0 %v2082_v13 }
  0xf9   : > { %1357 = vmatprep.subr.bf16.mxu1 %v2085_v14 }
  0xfb   : > { %1317 = vmatpush2.bf16.msra.mxu0 %v2080_v15 }
  0xfc   : > { %1358 = vmatpush2.bf16.msra.mxu1 %v2083_v16  ;;  %1368 = vmatprep.subr.bf16.mxu0 %v2090_v17 }
  0xfe   : > { %1319 = vmatmul.mubr.bf16.vlgmr.msra.gmra.mxu0 %v1581_v18 }
  0xff   : > { %1360 = vmatmul.mubr.bf16.vlgmr.msra.gmra.mxu1 %v1583_v19  ;;  %1369 = vmatpush1.bf16.msra.mxu0 %v2088_v20 }
 0x100   : > { %1400 = vmatprep.mubr.bf16.mxu0 %v2356_v23  ;;  %1370 = vmatprep.subr.bf16.mxu0 %v2095_v21 }
 0x103   : > { %1371 = vmatpush1.bf16.msra.mxu0 %v2093_v22 }
 0x104   : > { %1372 = vmatprep.subr.bf16.mxu0 %v2098_v24 }
 0x107   : > { %1373 = vmatpush1.bf16.msra.mxu0 %v2096_v25 }
 0x108   : > { %1374 = vmatprep.subr.bf16.mxu0 %v2101_v26 }
 0x10b   : > { %1375 = vmatpush1.bf16.msra.mxu0 %v2099_v27 }
 0x10c   : > { %1376 = vmatprep.subr.bf16.mxu0 %v2104_v28 }
 0x10f   : > { %1377 = vmatpush1.bf16.msra.mxu0 %v2102_v29 }
 0x110   : > { %1378 = vmatprep.subr.bf16.mxu0 %v2107_v30 }
 0x113   : > { %1379 = vmatpush1.bf16.msra.mxu0 %v2105_v31 }
 0x114   : > { %1380 = vmatprep.subr.bf16.mxu0 %v2110_v32 }
 0x117   : > { %1381 = vmatpush1.bf16.msra.mxu0 %v2108_v33 }
 0x118   : > { %1382 = vmatprep.subr.bf16.mxu0 %v2113_v34 }
 0x11b   : > { %1383 = vmatpush1.bf16.msra.mxu0 %v2111_v35 }
 0x11e   : > { %1401 = vmatmul.mubr.bf16.vlgmr.msra.gmra.mxu0 %v2114_v36 }
 0x17e   : > { %v1238_v37 = vpop.f32.mrf.mxu0 }
 0x17f   : > { %v1279_v38 = vpop.f32.mrf.mxu1 }
 0x180   : > { %v1280_v39 = vadd.f32 %v1279_v38, %v1238_v37  ;;  %v1240_v40 = vpop.f32.mrf.mxu0 }
 0x181   : > { %v1281_v41 = vpop.f32.mrf.mxu1 }
 0x182   : > { %v1282_v42 = vadd.f32 %v1281_v41, %v1240_v40  ;;  %v1242_v43 = vpop.f32.mrf.mxu0 }
 0x183   : > { %v1283_v44 = vpop.f32.mrf.mxu1 }
 0x184   : > { %v1243_v45 = vpop.f32.mrf.mxu0 }
 0x185   : > { %v1284_v46 = vpop.f32.mrf.mxu1 }
 0x1be   : > { %v1320_v47 = vpop.f32.mrf.mxu0 }
 0x1bf   : > { %v1361_v48 = vpop.f32.mrf.mxu1  ;;  %v1321_v55 = vadd.f32 %v1320_v47, %v1280_v39 }
 0x1c0   : > { %v1322_v49 = vpop.f32.mrf.mxu0 }
 0x1c1   : > { %v1363_v50 = vpop.f32.mrf.mxu1  ;;  %v1323_v56 = vadd.f32 %v1322_v49, %v1282_v42  ;;  %v1362_v57 = vadd.f32 %v1361_v48, %v1321_v55 }
 0x1c2   : > { %v1324_v51 = vpop.f32.mrf.mxu0 }
 0x1c3   : > { %v1365_v52 = vpop.f32.mrf.mxu1  ;;  %v1364_v60 = vadd.f32 %v1363_v50, %v1323_v56 }
 0x1c4   : > { %v1325_v53 = vpop.f32.mrf.mxu0 }
 0x1c5   : > { %v1366_v54 = vpop.f32.mrf.mxu1 }
 0x1de   : > { %v1402_v59 = vpop.f32.mrf.mxu0 }
 0x1df   : > { %v1403_v61 = vadd.f32 %v1402_v59, %v1362_v57 }
 0x1e0   : > { %v1404_v63 = vpop.f32.mrf.mxu0 }
 0x1e1   : > { %v1409_v0 = vadd.f32 %v1403_v61, %v301_v58  ;;  %v1405_v1 = vadd.f32 %v1404_v63, %v1364_v60  ;;  %1416 = sbr.rel (%p1730_p1) target bundleno = 494 (0x1ee), region = 52 }
 0x1e2   : > { %v1406_v2 = vpop.f32.mrf.mxu0 }
 0x1e3   : > { %1411 = vst [vmem:[#allocation2] sm:$0xff] %v1409_v0  ;;  %v1410_v3 = vadd.f32 %v1405_v1, %v302_v62 }
 0x1e4   : > { %v1407_v4 = vpop.f32.mrf.mxu0 }
 0x1e5   : > { %1412 = vst [vmem:[#allocation2 + $0x8] sm:$0xff] %v1410_v3 }
 0x1ea   : > { %v1417_v5 = vld [vmem:[#allocation2] sm:$0xff] }
 0x1eb   : > { %1419 = vst [vmem:[%s2591_s22] sm:$0xff] %v1417_v5 }
 0x1ec   : > { %v1418_v6 = vld [vmem:[#allocation2 + $0x8] sm:$0xff] }
 0x1ed   : > { %1420 = vst [vmem:[%s2591_s22 + $0x8] sm:$0xff] %v1418_v6 }
 0x1ee PF: > { %s2870_s26 = sld [smem:[#allocation16_spill]]  ;;  %s1438_s29 = sshll.u32 %s2591_s22, 4  ;;  %s1439_s29 = int_to_ptr.vmem [resolvable:$true] %s1438_s29 }
 0x1ef   : > { %s2871_s30 = sld [smem:[#allocation18_spill]]  ;;  %s1422_s21 = scalar_lea.sflag [#allocation5], %s274_s28 }
 0x1f0   : > { %s2872_s18 = sld [smem:[#allocation26_spill]]  ;;  %s2197_s20 = scalar_lea.vmem %s1439_s29, 256 }
 0x1f1   : > { %p2198_p5 = scmp.ne.s32.totalorder %s1439_s29, %s2197_s20  ;;  %s2357_s15 = smov [#allocation9]  }
 0x1f2   : > { %s2201_s10 = sshll.u32 %s2357_s15, 4  ;;  %s2202_s10 = int_to_ptr.vmem [resolvable:$false] %s2201_s10 }
 0x1f3   : > { %s2203_s11 = scalar_lea.vmem %s2202_s10, 512  ;;  %p2204_p11 = scmp.lt.s32.totalorder %s1439_s29, %s2202_s10 }
 0x1f4   : > { %s1738_s24 = sshll.u32 %s2870_s26, 8  ;;  %p2205_p12 = scmp.lt.s32.totalorder %s2203_s11, %s2197_s20 }
 0x1f5   : > { %p2874_p8 = scmp.ne.s32.totalorder %s2871_s30, 0 }
 0x1f6   : > { %s2873_s3 = smov %s2872_s18  ;;  %s1436_s12 = scalar_lea.hbm %s2872_s18, %s1738_s24 }
 0x1f7   : > { %p2199_p9 = pnand %p2198_p5, %p2874_p8  ;;  %p2206_p13 = por %p2205_p12, %p2204_p11 }
 0x1f9   : > { %p2200_p10 = pneg %p2199_p9 }
 0x1fb   : > { %p2207_p2 = pnand %p2206_p13, %p2200_p10 }
 0x1fd   : > { %2210 = shalt.err (!%p2207_p2)
}
 0x1fe   : > { %s2211_s5 = scalar_lea.hbm %s1436_s12, 256  ;;  %s2215_s6 = scalar_lea.hbm %s2873_s3, 512 }
 0x1ff   : > { %p2212_p3 = scmp.ne.s32.totalorder %s1436_s12, %s2211_s5  ;;  %p2216_p0 = scmp.lt.s32.totalorder %s1436_s12, %s2873_s3 }
 0x200   : > { %p2217_p4 = scmp.lt.s32.totalorder %s2215_s6, %s2211_s5 }
 0x201   : > { %p2213_p6 = pnand %p2212_p3, %p2874_p8 }
 0x202   : > { %p2218_p1 = por %p2217_p4, %p2216_p0 }
 0x203   : > { %p2214_p7 = pneg %p2213_p6 }
 0x205   : > { %p2219_p5 = pnand %p2218_p1, %p2214_p7 }
 0x207   : > { %2222 = shalt.err (!%p2219_p5)
}
 0x208   : > { %1753 = dma.vmem_to_hbm [thread:$0]  (%p2874_p8), %s1439_s29, 256, %s1436_s12, %s1422_s21  }
 0x209 PF: > { %s2875_s8 = sld [smem:[#allocation14_spill]]  ;;  %p1773_p9 = scmp.ge.s32.totalorder %s2349_s25, 2 }
 0x20a   : > { %s2876_s22 = sld [smem:[#allocation19_spill]] }
 0x20f   : > { %s1450_s26 = sand.u32 1, %s2875_s8  }
 0x210   : > { %p2877_p10 = scmp.ne.s32.totalorder %s2876_s22, 0  ;;  %s1451_s24 = scalar_lea.sflag [#allocation5], %s1450_s26 }
 0x212   : > { %p1767_p11 = pnand %p1773_p9, %p2877_p10 }
 0x214   : > { %p1768_p12 = pneg %p1767_p11 }
 0x216   : > { %2292 = dma.done.wait (%p1768_p12), %s1451_s24, 256  }
 0x217   : > { %2294 = vsyncadd (%p1768_p12), %s1451_s24, 4294967040  ;;  %s22_s25 = sadd.s32 1, %s2349_s25   ;;  %s2879_s30 = sld [smem:[#allocation23_spill]] }
 0x218   : > { %p2782_p13 = scmp.ge.s32.totalorder %s22_s25, 6   ;;  %s2880_s9 = sld [smem:[#allocation22_spill]] }
 0x219   : > { %s2881_s29 = sld [smem:[#allocation15_spill]]  ;;  %s2886_s12 = smov %s2301_s13 }
 0x21a   : > { %s2882_s20 = sld [smem:[#allocation24_spill]]  ;;  %s2887_s13 = smov %s2305_s14 }
 0x21b   : > { %s2883_s22 = sld [smem:[#allocation17_spill]]  ;;  %s2889_s15 = smov %s2313_s16 }
 0x21c   : > { %s2884_s10 = sld [smem:[#allocation20_spill]]  ;;  %s2890_s16 = smov %s2317_s17 }
 0x21d   : > { %s2885_s24 = sld [smem:[#allocation21_spill]]  ;;  %s2888_s14 = smov %s2879_s30 }
 0x21e   : > { %s2891_s17 = smov %s2880_s9  ;;  %s2892_s18 = smov %s2325_s19 }
 0x21f   : > { %s2893_s19 = smov %s2881_s29  ;;  %s2894_s21 = smov %s2341_s23 }
 0x220   :  { %21 = sbr.rel (!%p2782_p13) target bundleno = 15 (0xf), region = 103 }
 0x222   : > { %s2895_s23 = smov %s2884_s10 }
 0x225   :  { %1456 = vsyncpa [#allocation4], 1 }
 0x226   :  { %1458 = vsyncpa [#allocation4 + $0x1], 1 }
 0x227   :  { %1459 = vsyncpa [#allocation7], 1 }
 0x228   :  { %1461 = vsyncpa [#allocation7 + $0x1], 1 }
 0x229   :  { %1462 = vsyncpa [#allocation5], 1 }
 0x22a   :  { %1464 = vsyncpa [#allocation5 + $0x1], 1 }

</bundles_post_ra>
